<compile_context>
chip_gen: v5e
topology: v5e:2x2
jax: 0.10.0
libtpu: 0.0.40
codegen_flags: <defaults>
</compile_context>

<pallas_src>
import functools
import math

import jax
import jax.numpy as jnp
from jax import lax
from jax.experimental import pallas as pl
from jax.experimental.pallas import tpu as pltpu


_DEFAULT_BLOCK_BYTES = 6 << 20      # per-input, per-buffer HBM->VMEM block
_DEFAULT_CHUNK_ELEMS = 64 * 1024    # elements per in-kernel compute chunk


def _nan_l1_kernel(yp_ref, yt_ref, mask_ref, sum_ref, cnt_ref, *,
                   rows_total, tile_rows, chunk_rows, tiles_per_split,
                   n_tiles):
    """Accumulate per-lane |error| sums / valid counts for one [tile_rows, L] block."""
    c = pl.program_id(0)          # split index ("parallel"; 2 TCs on v7x)
    i = pl.program_id(1)          # block index within the split (reduction)

    @pl.when(i == 0)
    def _init():
        sum_ref[...] = jnp.zeros_like(sum_ref)
        cnt_ref[...] = jnp.zeros_like(cnt_ref)

    lanes = yp_ref.shape[1]

    def chunk(start, nrows):
        """Process rows [start, start+nrows) of this block -> (1, L) partials."""
        yp = yp_ref[pl.ds(start, nrows), :].astype(jnp.float32)
        yt = yt_ref[pl.ds(start, nrows), :].astype(jnp.float32)
        valid = jnp.logical_not(jnp.isnan(yt))
        mask_ref[pl.ds(start, nrows), :] = valid.astype(jnp.int8)
        validf = valid.astype(jnp.float32)
        # PyTorch-exact: y_pred * mask - where(mask, y_true, 0)
        err = jnp.abs(yp * validf - jnp.where(valid, yt, 0.0))
        s = jnp.sum(err, axis=0, keepdims=True)                        # (1, L)
        n = jnp.sum(validf, axis=0, keepdims=True).astype(jnp.int32)   # (1, L)
        return s, n

    def run(n_rows):              # n_rows is a static Python int
        n_full, rem = divmod(n_rows, chunk_rows)
        s = jnp.zeros((1, lanes), jnp.float32)
        n = jnp.zeros((1, lanes), jnp.int32)

        if n_full > 0:
            def body(k, carry):
                cs, cn = carry
                ds_, dn_ = chunk(pl.multiple_of(k * chunk_rows, 32), chunk_rows)
                return cs + ds_, cn + dn_
            s, n = lax.fori_loop(0, n_full, body, (s, n))
        if rem:
            ds_, dn_ = chunk(n_full * chunk_rows, rem)
            s, n = s + ds_, n + dn_

        sum_ref[0] += s
        cnt_ref[0] += n

    # Static number of real rows in the globally-last block.
    last_rows = rows_total - (n_tiles - 1) * tile_rows
    if last_rows == tile_rows:
        # No ragged edge anywhere: every block takes the check-free fast path.
        run(tile_rows)
    else:
        t = c * tiles_per_split + i          # global block id

        @pl.when(t < n_tiles - 1)
        def _interior():
            run(tile_rows)                   # mask/bounds-check-free hot path

        @pl.when(t == n_tiles - 1)
        def _edge():
            run(last_rows)                   # static bound; never reads padding


def multi_dim_nan_tolerant_l1_loss(y_pred, y_true, *, block_rows=None,
                                   chunk_rows=None,
                                   block_bytes=_DEFAULT_BLOCK_BYTES):
    """Pallas equivalent of MultiDimNaNTolerantL1Loss.forward.

    Args:
      y_pred: [batch, num_dims] float array.
      y_true: [batch, num_dims] float array (may contain NaNs).
    Returns:
      (dim_means: [num_dims] f32, mask: [batch, num_dims] bool)
    """
    assert y_pred.shape == y_true.shape, \
        "Predictions and targets must have the same shape"
    assert y_pred.ndim == 2, "expected [batch, num_dims]"
    y_pred = jnp.asarray(y_pred)
    y_true = jnp.asarray(y_true)
    B, D = y_pred.shape
    N = B * D

    # Lane width: smallest multiple of 128 divisible by D, so that
    # flat_index % D == lane % D (dim identity is a pure lane property).
    L = (128 * D) // math.gcd(128, D)
    M = -(-N // L)                              # rows of the flat [M, L] view
    n_pad = M * L - N

    yp_flat = y_pred.reshape(-1)
    yt_flat = y_true.reshape(-1)
    if n_pad:
        # Only non-L-aligned shapes pay this copy; padded targets are NaN so
        # they mask themselves out with zero in-kernel cost.
        yp_flat = jnp.pad(yp_flat, (0, n_pad))
        yt_flat = jnp.pad(yt_flat, (0, n_pad), constant_values=jnp.nan)
    yp2 = yp_flat.reshape(M, L)                 # free (row-major) reshapes
    yt2 = yt_flat.reshape(M, L)

    itemsize = max(jnp.dtype(y_pred.dtype).itemsize,
                   jnp.dtype(y_true.dtype).itemsize)

    # Compute-chunk rows (keeps Mosaic vector temporaries small).
    if chunk_rows is None:
        chunk_rows = _DEFAULT_CHUNK_ELEMS // L
    chunk_rows = max(32, (chunk_rows // 32) * 32)

    # DMA block rows (large, dtype-aware, amortizes per-grid-step overhead).
    if block_rows is None:
        block_rows = (block_bytes // (L * itemsize)) // chunk_rows * chunk_rows
    block_rows = max(32, (block_rows // 32) * 32)
    if block_rows >= M:
        block_rows = M                          # single (possibly tiny) block

    n_tiles = pl.cdiv(M, block_rows)

    # Nudge the block count to an even number when cheap so the leading
    # "parallel" axis can split the reduction across v7x's two TensorCores
    # without ever creating phantom blocks.
    if n_tiles >= 3 and n_tiles % 2 == 1:
        alt = -(-M // (n_tiles + 1))
        alt = max(chunk_rows, (-(-alt // chunk_rows)) * chunk_rows)
        if alt < M and pl.cdiv(M, alt) % 2 == 0:
            block_rows = alt
            n_tiles = pl.cdiv(M, alt)

    n_split = 2 if (n_tiles >= 2 and n_tiles % 2 == 0) else 1
    tiles_per_split = n_tiles // n_split

    kernel = functools.partial(
        _nan_l1_kernel, rows_total=M, tile_rows=block_rows,
        chunk_rows=chunk_rows, tiles_per_split=tiles_per_split,
        n_tiles=n_tiles)

    def data_idx(c, i):
        return (c * tiles_per_split + i, 0)

    # VMEM: 2 inputs x 2 buffers x block + int8 mask x 2 buffers + chunk temps.
    est_vmem = (2 * 2 * block_rows * L * itemsize
                + 2 * block_rows * L
                + 8 * chunk_rows * L * 4
                + n_split * 2 * L * 16)
    vmem_limit = int(min(max(32 << 20, est_vmem * 5 // 4 + (4 << 20)), 56 << 20))

    mask_i8, sums, cnts = pl.pallas_call(
        kernel,
        out_shape=(
            jax.ShapeDtypeStruct((M, L), jnp.int8),            # validity mask
            jax.ShapeDtypeStruct((n_split, 1, L), jnp.float32),  # per-lane sums
            jax.ShapeDtypeStruct((n_split, 1, L), jnp.int32),    # per-lane counts
        ),
        grid_spec=pltpu.PrefetchScalarGridSpec(
            num_scalar_prefetch=0,
            grid=(n_split, tiles_per_split),
            in_specs=[
                pl.BlockSpec((block_rows, L), data_idx),
                pl.BlockSpec((block_rows, L), data_idx),
            ],
            out_specs=[
                pl.BlockSpec((block_rows, L), data_idx),
                pl.BlockSpec((1, 1, L), lambda c, i: (c, 0, 0)),
                pl.BlockSpec((1, 1, L), lambda c, i: (c, 0, 0)),
            ],
        ),
        compiler_params=pltpu.CompilerParams(
            dimension_semantics=("parallel", "arbitrary"),
            vmem_limit_bytes=vmem_limit),
    )(yp2, yt2)

    # Tiny wrapper-side folds (a few KiB): splits+sublane, then lanes -> dims.
    lane_sum = jnp.sum(sums, axis=(0, 1))                      # (L,)
    lane_cnt = jnp.sum(cnts, axis=(0, 1))                      # (L,)
    dim_sum = jnp.sum(lane_sum.reshape(L // D, D), axis=0)     # (D,)
    dim_cnt = jnp.sum(lane_cnt.reshape(L // D, D), axis=0)     # (D,)
    dim_means = dim_sum / jnp.maximum(dim_cnt, 1).astype(jnp.float32)

    mask = mask_i8.reshape(-1)[:N].reshape(B, D).astype(jnp.bool_)
    return dim_means, mask


def _reference(y_pred, y_true):
    """Pure-JAX transcription of the PyTorch forward."""
    mask = jnp.logical_not(jnp.isnan(y_true))
    n_valid = jnp.maximum(jnp.sum(mask, axis=0), 1)
    y_pred_m = y_pred * mask.astype(y_pred.dtype)
    y_true_m = jnp.where(mask, y_true, jnp.zeros_like(y_true))
    dim_losses = jnp.sum(jnp.abs(y_pred_m - y_true_m), axis=0)
    return dim_losses / n_valid, mask


if __name__ == "__main__":
    root = jax.random.PRNGKey(0)

    def make(key, b, d, nan_p, dtype=jnp.float32, all_nan_dim=None):
        k1, k2, k3 = jax.random.split(key, 3)
        yp = jax.random.normal(k1, (b, d), jnp.float32)
        yt = jax.random.normal(k2, (b, d), jnp.float32)
        yt = jnp.where(jax.random.bernoulli(k3, nan_p, (b, d)), jnp.nan, yt)
        if all_nan_dim is not None:
            yt = yt.at[:, all_nan_dim].set(jnp.nan)
        return yp.astype(dtype), yt.astype(dtype)

    configs = [
        # Small shape consistent with the module; all-NaN dim -> clamp(min=1).
        dict(shape=(16, 4), nan_p=0.3, all_nan_dim=3, kw={}),
        # Pad path + ragged edge block + multi-block reduction (forced small blocks).
        dict(shape=(4200, 2), nan_p=0.25, all_nan_dim=None,
             kw=dict(block_rows=32, chunk_rows=32)),
        # Aligned multi-block case with the 2-way "parallel" split and a
        # multi-chunk inner loop per block.
        dict(shape=(8192, 4), nan_p=0.1, all_nan_dim=None,
             kw=dict(block_rows=64, chunk_rows=32)),
        # num_dims that does not divide 128 -> lcm lane width (L = 384).
        dict(shape=(300, 3), nan_p=0.4, all_nan_dim=None, kw={}),
        # bf16 inputs (dtype-aware sizing, in-kernel f32 accumulation).
        dict(shape=(1024, 2), nan_p=0.2, all_nan_dim=None, kw={},
             dtype=jnp.bfloat16),
    ]

    keys = jax.random.split(root, len(configs))
    for idx, cfg in enumerate(configs):
        b, d = cfg["shape"]
        dtype = cfg.get("dtype", jnp.float32)
        yp, yt = make(keys[idx], b, d, cfg["nan_p"], dtype, cfg["all_nan_dim"])

        dim_means, mask = multi_dim_nan_tolerant_l1_loss(yp, yt, **cfg["kw"])
        jax.block_until_ready((dim_means, mask))

        ref_means, ref_mask = _reference(yp.astype(jnp.float32),
                                         yt.astype(jnp.float32))
        assert dim_means.shape == (d,) and mask.shape == (b, d)
        assert bool(jnp.all(mask == ref_mask)), f"mask mismatch (config {idx})"
        assert jnp.allclose(dim_means, ref_means, atol=1e-5, rtol=1e-4), \
            (idx, dim_means, ref_means)

    print("KERNEL_OK")
</pallas_src>

<mosaic_0001>
module attributes {stable_mosaic.version = 11 : i64} {
  func.func @_nan_l1_kernel(%arg0: i32, %arg1: i32, %arg2: memref<1x128xf32, #tpu.memory_space<vmem>>, %arg3: memref<1x128xf32, #tpu.memory_space<vmem>>, %arg4: memref<1x128xi8, #tpu.memory_space<vmem>>, %arg5: memref<1x1x128xf32, #tpu.memory_space<vmem>>, %arg6: memref<1x1x128xi32, #tpu.memory_space<vmem>>) attributes {dimension_semantics = [#tpu.dimension_semantics<parallel>, #tpu.dimension_semantics<arbitrary>], iteration_bounds = array<i64: 1, 1>, scalar_prefetch = 0 : i64, scratch_operands = 0 : i64, tpu.core_type = #tpu.core_type<tc>, window_params = [{transform_indices = @transform_0, window_bounds = array<i64: 1, 128>}, {transform_indices = @transform_1, window_bounds = array<i64: 1, 128>}, {transform_indices = @transform_2, window_bounds = array<i64: 1, 128>}, {transform_indices = @transform_3, window_bounds = array<i64: 1, 1, 128>}, {transform_indices = @transform_4, window_bounds = array<i64: 1, 1, 128>}]} {
    %c0_i32 = arith.constant 0 : i32
    %0 = arith.cmpi eq, %arg1, %c0_i32 : i32
    %1 = arith.extui %0 : i1 to i32
    %c0_i32_0 = arith.constant 0 : i32
    %2 = arith.cmpi ne, %1, %c0_i32_0 : i32
    scf.if %2 {
      %cst_23 = arith.constant 0.000000e+00 : f32
      %37 = vector.broadcast %cst_23 : f32 to vector<1x1x128xf32>
      %c0_24 = arith.constant 0 : index
      %c0_25 = arith.constant 0 : index
      %c0_26 = arith.constant 0 : index
      %38 = vector.load %arg5[%c0_24, %c0_25, %c0_26] : memref<1x1x128xf32, #tpu.memory_space<vmem>>, vector<1x1x128xf32>
      tpu.vector_store %arg5[%c0_24, %c0_25, %c0_26], %37 {strides = array<i32>} : memref<1x1x128xf32, #tpu.memory_space<vmem>>, vector<1x1x128xf32>,
      %c0_i32_27 = arith.constant 0 : i32
      %39 = vector.broadcast %c0_i32_27 : i32 to vector<1x1x128xi32>
      %c0_28 = arith.constant 0 : index
      %c0_29 = arith.constant 0 : index
      %c0_30 = arith.constant 0 : index
      %40 = vector.load %arg6[%c0_28, %c0_29, %c0_30] : memref<1x1x128xi32, #tpu.memory_space<vmem>>, vector<1x1x128xi32>
      tpu.vector_store %arg6[%c0_28, %c0_29, %c0_30], %39 {strides = array<i32>} : memref<1x1x128xi32, #tpu.memory_space<vmem>>, vector<1x1x128xi32>,
    } else {
    }
    %cst = arith.constant 0.000000e+00 : f32
    %3 = vector.broadcast %cst : f32 to vector<1x128xf32>
    %c0_i32_1 = arith.constant 0 : i32
    %4 = vector.broadcast %c0_i32_1 : i32 to vector<1x128xi32>
    %c0 = arith.constant 0 : index
    %c0_2 = arith.constant 0 : index
    %5 = vector.load %arg2[%c0, %c0_2] : memref<1x128xf32, #tpu.memory_space<vmem>>, vector<1x128xf32>
    %c0_3 = arith.constant 0 : index
    %c0_4 = arith.constant 0 : index
    %6 = vector.load %arg3[%c0_3, %c0_4] : memref<1x128xf32, #tpu.memory_space<vmem>>, vector<1x128xf32>
    %7 = arith.cmpf one, %6, %6 : vector<1x128xf32>
    %cst_5 = arith.constant dense<true> : vector<1x128xi1>
    %8 = arith.xori %7, %cst_5 : vector<1x128xi1>
    %9 = arith.extui %8 : vector<1x128xi1> to vector<1x128xi8>
    %c0_6 = arith.constant 0 : index
    %c0_7 = arith.constant 0 : index
    %10 = vector.load %arg4[%c0_6, %c0_7] : memref<1x128xi8, #tpu.memory_space<vmem>>, vector<1x128xi8>
    tpu.vector_store %arg4[%c0_6, %c0_7], %9 {strides = array<i32>} : memref<1x128xi8, #tpu.memory_space<vmem>>, vector<1x128xi8>,
    %11 = arith.extui %8 : vector<1x128xi1> to vector<1x128xi32>
    %12 = arith.sitofp %11 : vector<1x128xi32> to vector<1x128xf32>
    %13 = arith.mulf %5, %12 : vector<1x128xf32>
    %cst_8 = arith.constant 0.000000e+00 : f32
    %14 = vector.broadcast %cst_8 : f32 to vector<1x128xf32>
    %15 = arith.select %8, %6, %14 : vector<1x128xi1>, vector<1x128xf32>
    %16 = arith.subf %13, %15 : vector<1x128xf32>
    %17 = math.absf %16 : vector<1x128xf32>
    %cst_9 = arith.constant dense<0.000000e+00> : vector<128xf32>
    %18 = vector.multi_reduction <add>, %17, %cst_9 [0] : vector<1x128xf32> to vector<128xf32>
    %19 = vector.shape_cast %18 : vector<128xf32> to vector<1x128xf32>
    %cst_10 = arith.constant dense<0.000000e+00> : vector<128xf32>
    %20 = vector.multi_reduction <add>, %12, %cst_10 [0] : vector<1x128xf32> to vector<128xf32>
    %21 = vector.shape_cast %20 : vector<128xf32> to vector<1x128xf32>
    %22 = arith.fptosi %21 : vector<1x128xf32> to vector<1x128xi32>
    %23 = arith.addf %3, %19 : vector<1x128xf32>
    %24 = arith.addi %4, %22 : vector<1x128xi32>
    %c0_11 = arith.constant 0 : index
    %c0_12 = arith.constant 0 : index
    %c0_13 = arith.constant 0 : index
    %25 = vector.load %arg5[%c0_11, %c0_12, %c0_13] : memref<1x1x128xf32, #tpu.memory_space<vmem>>, vector<1x1x128xf32>
    %26 = vector.shape_cast %25 : vector<1x1x128xf32> to vector<1x128xf32>
    %27 = arith.addf %26, %23 : vector<1x128xf32>
    %c0_14 = arith.constant 0 : index
    %c0_15 = arith.constant 0 : index
    %c0_16 = arith.constant 0 : index
    %28 = vector.load %arg5[%c0_14, %c0_15, %c0_16] : memref<1x1x128xf32, #tpu.memory_space<vmem>>, vector<1x1x128xf32>
    %29 = vector.shape_cast %28 : vector<1x1x128xf32> to vector<1x128xf32>
    %30 = vector.shape_cast %27 : vector<1x128xf32> to vector<1x1x128xf32>
    tpu.vector_store %arg5[%c0_14, %c0_15, %c0_16], %30 {strides = array<i32>} : memref<1x1x128xf32, #tpu.memory_space<vmem>>, vector<1x1x128xf32>,
    %c0_17 = arith.constant 0 : index
    %c0_18 = arith.constant 0 : index
    %c0_19 = arith.constant 0 : index
    %31 = vector.load %arg6[%c0_17, %c0_18, %c0_19] : memref<1x1x128xi32, #tpu.memory_space<vmem>>, vector<1x1x128xi32>
    %32 = vector.shape_cast %31 : vector<1x1x128xi32> to vector<1x128xi32>
    %33 = arith.addi %32, %24 : vector<1x128xi32>
    %c0_20 = arith.constant 0 : index
    %c0_21 = arith.constant 0 : index
    %c0_22 = arith.constant 0 : index
    %34 = vector.load %arg6[%c0_20, %c0_21, %c0_22] : memref<1x1x128xi32, #tpu.memory_space<vmem>>, vector<1x1x128xi32>
    %35 = vector.shape_cast %34 : vector<1x1x128xi32> to vector<1x128xi32>
    %36 = vector.shape_cast %33 : vector<1x128xi32> to vector<1x1x128xi32>
    tpu.vector_store %arg6[%c0_20, %c0_21, %c0_22], %36 {strides = array<i32>} : memref<1x1x128xi32, #tpu.memory_space<vmem>>, vector<1x1x128xi32>,
    return
  }
  func.func @transform_0(%arg0: i32, %arg1: i32) -> (i32, i32) {
    %c1_i32 = arith.constant 1 : i32
    %0 = arith.muli %arg0, %c1_i32 : i32
    %1 = arith.addi %0, %arg1 : i32
    %c0_i32 = arith.constant 0 : i32
    %c0_i32_0 = arith.constant 0 : i32
    return %1, %c0_i32 : i32, i32
  }
  func.func @transform_1(%arg0: i32, %arg1: i32) -> (i32, i32) {
    %c1_i32 = arith.constant 1 : i32
    %0 = arith.muli %arg0, %c1_i32 : i32
    %1 = arith.addi %0, %arg1 : i32
    %c0_i32 = arith.constant 0 : i32
    %c0_i32_0 = arith.constant 0 : i32
    return %1, %c0_i32 : i32, i32
  }
  func.func @transform_2(%arg0: i32, %arg1: i32) -> (i32, i32) {
    %c1_i32 = arith.constant 1 : i32
    %0 = arith.muli %arg0, %c1_i32 : i32
    %1 = arith.addi %0, %arg1 : i32
    %c0_i32 = arith.constant 0 : i32
    %c0_i32_0 = arith.constant 0 : i32
    return %1, %c0_i32 : i32, i32
  }
  func.func @transform_3(%arg0: i32, %arg1: i32) -> (i32, i32, i32) {
    %c0_i32 = arith.constant 0 : i32
    %c0_i32_0 = arith.constant 0 : i32
    %c0_i32_1 = arith.constant 0 : i32
    return %arg0, %c0_i32, %c0_i32_0 : i32, i32, i32
  }
  func.func @transform_4(%arg0: i32, %arg1: i32) -> (i32, i32, i32) {
    %c0_i32 = arith.constant 0 : i32
    %c0_i32_0 = arith.constant 0 : i32
    %c0_i32_1 = arith.constant 0 : i32
    return %arg0, %c0_i32, %c0_i32_0 : i32, i32, i32
  }
}

</mosaic_0001>

<bundles_post_ra>
// kernel: tpu_custom_call.1
= control target key start
LH: loop header
LB: loop body
LE: loop exit
PB: predicated region body
PF: predicated region fallthrough
CT: control target
= control target key end

     0   :  { %10 = vsyncpa [#allocation3], 0  ;;  %s334_s0 = inlined_call_operand.hbm [shape: f32[1,128], index: 0, kind: input, shape index: {}]   ;;  %s335_s1 = inlined_call_operand.hbm [shape: f32[1,128], index: 1, kind: input, shape index: {}]   ;;  %s336_s2 = inlined_call_operand.hbm [shape: s8[1,128], index: 2, kind: output, shape index: {0}]   ;;  %s337_s3 = inlined_call_operand.hbm [shape: f32[1,1,128], index: 3, kind: output, shape index: {1}]   ;;  %s338_s4 = inlined_call_operand.hbm [shape: s32[1,1,128], index: 4, kind: output, shape index: {2}]  }
   0x1   :  { %11 = vsyncpa [#allocation6], 0 }
   0x2   :  { %12 = vsyncpa [#allocation4], 0 }
   0x3   :  { %13 = vsyncpa [#allocation9], 0  ;;  %s21_s17 = sshll.u32 %s334_s0, 4  ;;  %s279_s18 = smov [#allocation2]   ;;  %s22_s17 = int_to_ptr.hbm [resolvable:$true] %s21_s17 }
   0x4   :  { %s23_s19 = sshll.u32 %s279_s18, 4  ;;  %s34_s22 = sshll.u32 %s335_s1, 4  ;;  %s24_s19 = int_to_ptr.vmem [resolvable:$true] %s23_s19  ;;  %s35_s22 = int_to_ptr.hbm [resolvable:$true] %s34_s22 }
   0x5   :  { %26 = dma.hbm_to_vmem [thread:$0]  %s22_s17, 16, %s24_s19, [#allocation3]  }
   0x6   :  { %s280_s23 = smov [#allocation5]  }
   0x7   :  { %s36_s24 = sshll.u32 %s280_s23, 4  ;;  %s37_s24 = int_to_ptr.vmem [resolvable:$true] %s36_s24 }
   0x8   :  { %39 = dma.hbm_to_vmem [thread:$0]  %s35_s22, 16, %s37_s24, [#allocation6]  }
   0x9   :  { %271 = dma.done.wait [#allocation3], 16  }
   0xa   :  { %272 = vsyncadd [#allocation3], 4294967280 }
   0xb   :  { %273 = dma.done.wait [#allocation6], 16  }
   0xc   :  { %274 = vsyncadd [#allocation6], 4294967280  ;;  %v281_v0 = vmov 0.0   ;;  %v282_v1 = vmov 0   ;;  %v60_v2 = vld [vmem:[#allocation5] sm:$0x1] }
   0xd   :  { %57 = vst [vmem:[#allocation8] sm:$0x1] %v281_v0  ;;  %v59_v3 = vld [vmem:[#allocation2] sm:$0x1]  ;;  %vm61_vm0 = vcmp.ne.f32.partialorder %v60_v2, %v60_v2  ;;  %vm283_vm1 = vmmov 1   ;;  %vm68_vm3 = vcmask 1040384  }
   0xe   :  { %58 = vst [vmem:[#allocation10] sm:$0x1] %v282_v1  ;;  %vm62_vm2 = vmxor %vm61_vm0, %vm283_vm1  ;;  %vm69_vm4 = vsmask.f32 0  ;;  %s284_s0 = smov [#allocation7]   ;;  %s98_s27 = sshll.u32 %s336_s2, 4  ;;  %s99_s27 = int_to_ptr.hbm [resolvable:$true] %s98_s27 }
   0xf   :  { %v140_v4 = vsel %vm62_vm2, 1.0, %v281_v0  ;;  %v76_v5 = vsel %vm62_vm2, %v60_v2, 0.0  ;;  %v63_v6 = vsel %vm62_vm2, 1, %v282_v1  ;;  %s96_s1 = sshll.u32 %s284_s0, 4  ;;  %vm322_vm5 = vmand %vm68_vm3, %vm69_vm4  ;;  %v71_v16 = vld [vmem:[#allocation7] sm:$0x1]  ;;  %s97_s1 = int_to_ptr.vmem [resolvable:$true] %s96_s1 }
  0x10   :  { %v75_v8 = vmul.f32 %v140_v4, %v59_v3  ;;  %v142_v9 = vcvt.f32.s32 %v140_v4  ;;  %v64_v10 = vpack.c.b16 %v63_v6, %v63_v6  ;;  %s285_s28 = smov [#allocation8]   ;;  %s109_s6 = sshll.u32 %s337_s3, 4  ;;  %s110_s6 = int_to_ptr.hbm [resolvable:$true] %s109_s6 }
  0x11   :  { %s107_s29 = sshll.u32 %s285_s28, 4  ;;  %s286_s7 = smov [#allocation10]   ;;  %s108_s29 = int_to_ptr.vmem [resolvable:$true] %s107_s29 }
  0x12   :  { %v77_v11 = vsub.f32 %v75_v8, %v76_v5  ;;  %v65_v12 = vpack.c.b8 %v64_v10, %v64_v10  ;;  %s118_s8 = sshll.u32 %s286_s7, 4  ;;  %s120_s10 = sshll.u32 %s338_s4, 4  ;;  %s119_s8 = int_to_ptr.vmem [resolvable:$true] %s118_s8  ;;  %s121_s10 = int_to_ptr.hbm [resolvable:$true] %s120_s10 }
  0x14   :  { %v83_v14 = vld [vmem:[#allocation8] sm:$0x1]  ;;  %v78_v17 = vand.u32 2147483647, %v77_v11  ;;  %vm66_vm6 = vnez %v65_v12 }
  0x15   :  { %v86_v7 = vld [vmem:[#allocation10] sm:$0x1]  ;;  %v67_v18 = vsel %vm66_vm6, 16843009, %v282_v1 }
  0x16   :  { %v87_v13 = vadd.s32 %v142_v9, %v86_v7  ;;  %v84_v19 = vadd.f32 %v83_v14, %v78_v17  ;;  %v72_v20 = vsel %vm322_vm5, %v67_v18, %v71_v16 }
  0x17   :  { %73 = vst [vmem:[#allocation7] sm:$0x1] %v72_v20 }
  0x18   :  { %88 = vst [vmem:[#allocation10] sm:$0x1] %v87_v13  ;;  %101 = dma.vmem_to_hbm [thread:$0]  %s97_s1, 16, %s99_s27, [#allocation4]  }
  0x19   :  { %85 = vst [vmem:[#allocation8] sm:$0x1] %v84_v19 }
  0x1a   :  { %112 = dma.vmem_to_hbm [thread:$0]  %s108_s29, 16, %s110_s6, [#allocation9]  }
  0x1b   :  { %123 = dma.vmem_to_hbm [thread:$0]  %s119_s8, 16, %s121_s10, [#allocation9]  }
  0x1c   :  { %275 = dma.done.wait [#allocation4], 16  }
  0x1d   :  { %276 = vsyncadd [#allocation4], 4294967280 }
  0x1e   :  { %277 = dma.done.wait [#allocation9], 32  }
  0x1f   :  { %278 = vsyncadd [#allocation9], 4294967264 }
  0x20   :  { %136 = vsyncpa [#allocation3], 1 }
  0x21   :  { %137 = vsyncpa [#allocation6], 1 }
  0x22   :  { %138 = vsyncpa [#allocation4], 1 }
  0x23   :  { %139 = vsyncpa [#allocation9], 1 }

</bundles_post_ra>
